<compile_context>
chip_gen: v7x
topology: tpu7x:2x2x1
jax: 0.10.0
libtpu: 0.0.40
codegen_flags: <defaults>
</compile_context>

<pallas_src>
import jax
import jax.numpy as jnp
from jax.experimental import pallas as pl
from jax.experimental.pallas import tpu as pltpu


def _lifting_matmul_kernel(x_ref, w_ref, o_ref):
    # x_ref: (TM, KC)   im2col rows for TM output pixels (KC = K*K*Cin)
    # w_ref: (KC, NP)   flattened + lane-padded filter bank (NP multiple of 128)
    # o_ref: (TM, NP)   lane-dense output tile -> unmasked full-width stores
    o_ref[...] = jnp.dot(
        x_ref[...], w_ref[...], preferred_element_type=jnp.float32
    ).astype(o_ref.dtype)


def lifting_conv(x_nchw, filter_bank, *, padding=1, tile_m=256, compute_dtype=None):
    """x_nchw: (B, Cin, H, W); filter_bank: (OC, G, Cin, K, K) -> (B, OC, G, Ho, Wo).

    compute_dtype: optionally cast inputs (e.g. jnp.bfloat16 for v6e/v7x MXU);
    accumulation stays in f32 and the result is cast back to x's dtype.
    """
    B, Cin, H, W = x_nchw.shape
    OC, G, Cin_w, K, K2 = filter_bank.shape
    assert Cin == Cin_w and K == K2
    OCG = OC * G
    Ho = H + 2 * padding - K + 1
    Wo = W + 2 * padding - K + 1
    KC = K * K * Cin

    out_dtype = x_nchw.dtype
    if compute_dtype is not None:
        x_nchw = x_nchw.astype(compute_dtype)
        filter_bank = filter_bank.astype(compute_dtype)

    # ---- plain-JAX layout plumbing: im2col (NCHW -> (B*Ho*Wo, K*K*Cin)) ----
    x_nhwc = jnp.transpose(x_nchw, (0, 2, 3, 1))
    x_pad = jnp.pad(x_nhwc, ((0, 0), (padding, padding), (padding, padding), (0, 0)))
    taps = [x_pad[:, ky:ky + Ho, kx:kx + Wo, :] for ky in range(K) for kx in range(K)]
    cols = jnp.stack(taps, axis=3)                 # (B, Ho, Wo, K*K, Cin)
    cols = cols.reshape(B * Ho * Wo, KC)           # row = b*Ho*Wo + i*Wo + j

    # Weight: (OC, G, Cin, K, K) -> (K*K*Cin, OC*G); row = (ky*K+kx)*Cin + cin,
    # col = oc*G + g  (matches torch's reshape(OC*G, Cin, K, K) channel order).
    w_mat = jnp.transpose(filter_bank, (3, 4, 2, 0, 1)).reshape(KC, OCG)

    # Lane-dense N: pad OC*G up to a multiple of 128 (sliced off afterwards).
    NP = max(128, pl.cdiv(OCG, 128) * 128)
    w_mat = jnp.pad(w_mat, ((0, 0), (0, NP - OCG)))

    # Pad M rows to a multiple of tile_m (extra zero rows are sliced off).
    M = B * Ho * Wo
    MP = pl.cdiv(M, tile_m) * tile_m
    cols = jnp.pad(cols, ((0, MP - M), (0, 0)))

    out = pl.pallas_call(
        _lifting_matmul_kernel,
        out_shape=jax.ShapeDtypeStruct((MP, NP), out_dtype),
        grid=(MP // tile_m,),
        in_specs=[
            pl.BlockSpec((tile_m, KC), lambda m: (m, 0)),
            # Constant block index -> weight fetched once, stays resident in VMEM.
            pl.BlockSpec((KC, NP), lambda m: (0, 0)),
        ],
        out_specs=pl.BlockSpec((tile_m, NP), lambda m: (m, 0)),
        compiler_params=pltpu.CompilerParams(dimension_semantics=("parallel",)),
    )(cols, w_mat)

    # (MP, NP) -> (B, Ho, Wo, OC, G) -> (B, OC, G, Ho, Wo)  (matches torch .view)
    out = out[:M, :OCG].reshape(B, Ho, Wo, OC, G)
    return jnp.transpose(out, (0, 3, 4, 1, 2))


def sample_lifting_filter_bank(base_weight, group_order):
    """C4 lifting: stack the base filter rotated by each group element.
    base_weight: (OC, Cin, K, K) -> (OC, G, Cin, K, K)."""
    rots = [jnp.rot90(base_weight, k=g, axes=(2, 3)) for g in range(group_order)]
    return jnp.stack(rots, axis=1)


def reference_lifting_conv(x_nchw, filter_bank, *, padding=1):
    OC, G, Cin, K, _ = filter_bank.shape
    w = filter_bank.reshape(OC * G, Cin, K, K)
    y = jax.lax.conv_general_dilated(
        x_nchw, w, window_strides=(1, 1), padding=[(padding, padding)] * 2,
        dimension_numbers=("NCHW", "OIHW", "NCHW"))
    B, _, Ho, Wo = y.shape
    return y.reshape(B, OC, G, Ho, Wo)


if __name__ == "__main__":
    # Small deterministic config: C4 group, batch=2, Cin=4, OC=4, 16x16, 3x3 kernel.
    B, Cin, H, W = 2, 4, 16, 16
    OC, G, K = 4, 4, 3

    key = jax.random.PRNGKey(0)
    k_x, k_w = jax.random.split(key)
    x = jax.random.normal(k_x, (B, Cin, H, W), dtype=jnp.float32)
    base_weight = jax.random.normal(k_w, (OC, Cin, K, K), dtype=jnp.float32) * 0.1

    filter_bank = sample_lifting_filter_bank(base_weight, G)   # (OC, G, Cin, K, K)

    ref = jax.block_until_ready(reference_lifting_conv(x, filter_bank, padding=1))

    # f32 path: tight tolerance vs XLA conv reference.
    out = jax.block_until_ready(lifting_conv(x, filter_bank, padding=1))
    assert out.shape == (B, OC, G, H, W), out.shape
    assert jnp.allclose(out, ref, atol=1e-4, rtol=1e-4), float(jnp.max(jnp.abs(out - ref)))

    # bf16 compute path (v6e/v7x MXU), f32 accumulation: loose tolerance.
    out_bf16 = jax.block_until_ready(
        lifting_conv(x, filter_bank, padding=1, compute_dtype=jnp.bfloat16))
    assert out_bf16.shape == (B, OC, G, H, W), out_bf16.shape
    assert jnp.allclose(out_bf16, ref, atol=5e-2, rtol=5e-2), \
        float(jnp.max(jnp.abs(out_bf16 - ref)))

    print("KERNEL_OK")
</pallas_src>

<mosaic_0001>
module attributes {stable_mosaic.version = 11 : i64} {
  func.func @_lifting_matmul_kernel(%arg0: i32, %arg1: memref<256x36xf32, #tpu.memory_space<vmem>>, %arg2: memref<36x128xf32, #tpu.memory_space<vmem>>, %arg3: memref<256x128xf32, #tpu.memory_space<vmem>>) attributes {dimension_semantics = [#tpu.dimension_semantics<parallel>], iteration_bounds = array<i64: 2>, scalar_prefetch = 0 : i64, scratch_operands = 0 : i64, tpu.core_type = #tpu.core_type<tc>, window_params = [{transform_indices = @transform_0, window_bounds = array<i64: 256, 36>}, {pipeline_mode = #tpu.pipeline_mode<synchronous>, transform_indices = @transform_1, window_bounds = array<i64: 36, 128>}, {transform_indices = @transform_2, window_bounds = array<i64: 256, 128>}]} {
    %c0 = arith.constant 0 : index
    %c0_0 = arith.constant 0 : index
    %0 = vector.load %arg1[%c0, %c0_0] : memref<256x36xf32, #tpu.memory_space<vmem>>, vector<256x36xf32>
    %c0_1 = arith.constant 0 : index
    %c0_2 = arith.constant 0 : index
    %1 = vector.load %arg2[%c0_1, %c0_2] : memref<36x128xf32, #tpu.memory_space<vmem>>, vector<36x128xf32>
    %cst = arith.constant dense<0.000000e+00> : vector<256x128xf32>
    %2 = tpu.matmul %0, %1, %cst {dimension_numbers = #tpu.dot_dimension_numbers<[1], [0], [0], [1], [0, 0, 1, 1], [], []>} : vector<256x36xf32>, vector<36x128xf32>, vector<256x128xf32> -> vector<256x128xf32>
    %c0_3 = arith.constant 0 : index
    %c0_4 = arith.constant 0 : index
    %3 = vector.load %arg3[%c0_3, %c0_4] : memref<256x128xf32, #tpu.memory_space<vmem>>, vector<256x128xf32>
    tpu.vector_store %arg3[%c0_3, %c0_4], %2 {strides = array<i32>} : memref<256x128xf32, #tpu.memory_space<vmem>>, vector<256x128xf32>,
    return
  }
  func.func @transform_0(%arg0: i32) -> (i32, i32) {
    %c0_i32 = arith.constant 0 : i32
    %c0_i32_0 = arith.constant 0 : i32
    return %arg0, %c0_i32 : i32, i32
  }
  func.func @transform_1(%arg0: i32) -> (i32, i32) {
    %c0_i32 = arith.constant 0 : i32
    %c0_i32_0 = arith.constant 0 : i32
    %c0_i32_1 = arith.constant 0 : i32
    return %c0_i32, %c0_i32_0 : i32, i32
  }
  func.func @transform_2(%arg0: i32) -> (i32, i32) {
    %c0_i32 = arith.constant 0 : i32
    %c0_i32_0 = arith.constant 0 : i32
    return %arg0, %c0_i32 : i32, i32
  }
}

</mosaic_0001>

<bundles_post_ra>
// kernel: tpu_custom_call.1
= control target key start
LH: loop header
LB: loop body
LE: loop exit
PB: predicated region body
PF: predicated region fallthrough
CT: control target
= control target key end

     0   :  { %7 = vsyncpa [#allocation3], 0  ;;  %s1120_s0 = inlined_call_operand.vmem [shape: f32[512,36], index: 0, kind: input, shape index: {}]   ;;  %s1121_s1 = inlined_call_operand.vmem [shape: f32[36,128], index: 1, kind: input, shape index: {}]   ;;  %s1122_s2 = inlined_call_operand.hbm [shape: f32[512,128], index: 2, kind: output, shape index: {}]  }
   0x1   :  { %9 = vsyncpa [#allocation3 + $0x1], 0  ;;  %s894_s9 = smov 0   ;;  %s896_s10 = smov 0  }
   0x2   :  { %s898_s11 = smov 0   ;;  %s900_s12 = smov 0  }
   0x3 LB: > { %s915_s13 = sadd.s32 4294967295, %s874_s12   ;;  %s616_s14 = sadd.s32 4294967294, %s874_s12   ;;  %s874_s12 = sphi %s900_s12, %s1128_s12   ;;  %s870_s11 = sphi %s898_s11, %s1127_s11   ;;  %s866_s10 = sphi %s896_s10, %s1126_s10   ;;  %s862_s9 = sphi %s894_s9, %s1125_s9  }
   0x4   : > { %s919_s15 = sadd.s32 1, %s874_s12   ;;  %s69_s16 = sadd.s32 1, %s870_s11 }
   0x5   : > { %s66_s17 = ssub.s32 %s874_s12, %s919_s15  ;;  %p79_p0 = scmp.ne.s32.totalorder %s870_s11, %s866_s10 }
   0x6   : > { %p67_p1 = scmp.eq.s32.totalorder %s66_s17, 0  ;;  %p80_p2 = scmp.eq.s32.totalorder %s915_s13, 1 }
   0x7   : > { %p85_p3 = scmp.ne.s32.totalorder %s866_s10, %s862_s9  ;;  %p86_p4 = scmp.eq.s32.totalorder %s616_s14, 1 }
   0x8   : > { %s930_s18 = scalar_select %p67_p1, %s870_s11, %s69_s16  }
   0x9   : > { %p932_p5 = por %p80_p2, %p79_p0  ;;  %p936_p6 = por %p86_p4, %p85_p3 }
   0xa   : > { %p619_p7 = scmp.ge.s32.totalorder %s874_s12, 1  ;;  %p116_p8 = scmp.lt.s32.totalorder %s874_s12, 3 }
   0xc   : > { %p117_p9 = pnand %p619_p7, %p116_p8 }
   0xd   : > { %v177_v0 = vld [vmem:[%s1121_s1] sm:$0xff] (!%p117_p9)  ;;  %v178_v1 = vld [vmem:[%s1121_s1 + $0x8] sm:$0xff] (!%p117_p9)  ;;  %v179_v2 = vld [vmem:[%s1121_s1 + $0x10] sm:$0xff] (!%p117_p9)  ;;  %s621_s27 = sshll.u32 (!%p117_p9), %s915_s13, 5  ;;  %vm279_vm0 = vcmask (!%p117_p9), 1043456   ;;  %vm182_vm1 = vcmask (!%p117_p9), 293888  }
   0xe   : > { %120 = sbr.rel (%p117_p9) target bundleno = 283 (0x11b), region = 28  ;;  %v757_v3 = vpack.c.bf16 (!%p117_p9), %v178_v1, %v177_v0  ;;  %v180_v4 = vld [vmem:[%s1121_s1 + $0x18] sm:$0xff] (!%p117_p9)  ;;  %p139_p10 = scmp.lt.s32.totalorder (!%p117_p9), %s621_s27, 63  ;;  %v181_v6 = vld [vmem:[%s1121_s1 + $0x20] sm:$0xf] (!%p117_p9) }
   0xf   : > { %v761_v5 = vpack.c.bf16 (!%p117_p9), %v180_v4, %v179_v2  ;;  %s135_s8 = sand.u32 (!%p117_p9), 1, %s866_s10   ;;  %s661_s17 = sshll.u32 (!%p117_p9), %s915_s13, 12 }
  0x10   : > { %758 = vmatprep.subr.bf16.mxu0 (!%p117_p9), %v757_v3  ;;  %765 = vmatprep.subr.bf16.mxu1 (!%p117_p9), %v757_v3  ;;  %s620_s14 = sshll.u32 (!%p117_p9), %s135_s8, 8  ;;  %s1069_s24 = scalar_lea.hbm (!%p117_p9), %s1122_s2, %s661_s17 }
  0x11   : > { %760 = vmatpush3.bf16.msra.mxu0 (!%p117_p9), %v757_v3  ;;  %768 = vmatpush3.bf16.msra.mxu1 (!%p117_p9), %v757_v3  ;;  %s1034_s16 = scalar_lea.vmem (!%p117_p9), [#allocation2], %s620_s14  ;;  %s1079_s13 = scalar_lea.sflag (!%p117_p9), [#allocation3], %s135_s8 }
  0x12   : > { %762 = vmatprep.subr.bf16.mxu0 (!%p117_p9), %v761_v5  ;;  %766 = vmatprep.subr.bf16.mxu1 (!%p117_p9), %v761_v5  ;;  %s554_s21 = sshll.u32 (!%p117_p9), %s1034_s16, 4  ;;  %s876_s26 = smov (!%p117_p9), [#allocation2]   ;;  %s1071_s21 = int_to_ptr.vmem [resolvable:$true] %s554_s21 }
  0x13   : > { %s812_s25 = scalar_lea.vmem (!%p117_p9), %s1071_s21, 4096 }
  0x14   : > { %p813_p11 = scmp.ne.s32.totalorder (!%p117_p9), %s1071_s21, %s812_s25 }
  0x15   : > { %s1130_s27 = smov (!%p139_p10, %s621_s27), 63  ;;  %764 = vmatpush3.bf16.msra.mxu0 %v761_v5  ;;  %769 = vmatpush3.bf16.msra.mxu1 %v761_v5 }
  0x16   : > { %s622_s30 = sshll.u32 %s1130_s27, 3  ;;  %707 = vmatprep.subr.msk.mxu0 %vm279_vm0, %v181_v6  ;;  %767 = vmatprep.subr.msk.mxu1 %vm279_vm0, %v181_v6  ;;  %p814_p12 = pnand %p813_p11, %p932_p5 }
  0x17   : > { %s961_s7 = scalar_lea.vmem %s1120_s0, %s622_s30  ;;  %s816_s27 = sshll.u32 %s876_s26, 4  ;;  %s817_s27 = int_to_ptr.vmem [resolvable:$false] %s816_s27 }
  0x18   : > { %v145_v7 = vld [vmem:[%s961_s7] sm:$0xff]  ;;  %v146_v9 = vld [vmem:[%s961_s7 + $0x8] sm:$0xff]  ;;  %v147_v11 = vld [vmem:[%s961_s7 + $0x10] sm:$0xff]  ;;  %p815_p13 = pneg %p814_p12  ;;  %s818_s28 = scalar_lea.vmem %s817_s27, 8192 }
  0x19   : > { %v161_v8 = vld [vmem:[%s961_s7 + $0x80] sm:$0xff]  ;;  %709 = vmatprep.mubr.msk.f32.mxu0 %vm182_vm1, %v145_v7  ;;  %v162_v10 = vld [vmem:[%s961_s7 + $0x88] sm:$0xff]  ;;  %v163_v12 = vld [vmem:[%s961_s7 + $0x90] sm:$0xff]  ;;  %708 = vmatpush3.msk.msra.mxu0 %vm279_vm0, %v181_v6  ;;  %p819_p0 = scmp.lt.s32.totalorder %s1071_s21, %s817_s27  ;;  %p820_p1 = scmp.lt.s32.totalorder %s818_s28, %s812_s25 }
  0x1a   : > { %733 = vmatprep.mubr.msk.f32.mxu1 %vm182_vm1, %v161_v8  ;;  %770 = vmatpush3.msk.msra.mxu1 %vm279_vm0, %v181_v6  ;;  %v148_v13 = vld [vmem:[%s961_s7 + $0x18] sm:$0xff]  ;;  %v149_v15 = vld [vmem:[%s961_s7 + $0x20] sm:$0xff]  ;;  %v150_v17 = vld [vmem:[%s961_s7 + $0x28] sm:$0xff] }
  0x1b   : > { %710 = vmatmul.mubr.msk.f32.vlgmr.msra.gmra.mrb[0].mxu0 %vm182_vm1, %v146_v9  ;;  %734 = vmatmul.mubr.msk.f32.vlgmr.msra.gmra.mrb[0].mxu1 %vm182_vm1, %v162_v10  ;;  %v164_v14 = vld [vmem:[%s961_s7 + $0x98] sm:$0xff]  ;;  %v165_v16 = vld [vmem:[%s961_s7 + $0xa0] sm:$0xff]  ;;  %v166_v18 = vld [vmem:[%s961_s7 + $0xa8] sm:$0xff]  ;;  %p821_p2 = por %p820_p1, %p819_p0 }
  0x1c   : > { %712 = vmatprep.mubr.msk.f32.mxu0 %vm182_vm1, %v147_v11  ;;  %736 = vmatprep.mubr.msk.f32.mxu1 %vm182_vm1, %v163_v12  ;;  %v151_v19 = vld [vmem:[%s961_s7 + $0x30] sm:$0xff]  ;;  %v152_v21 = vld [vmem:[%s961_s7 + $0x38] sm:$0xff]  ;;  %v153_v23 = vld [vmem:[%s961_s7 + $0x40] sm:$0xff] }
  0x1d   : > { %v167_v20 = vld [vmem:[%s961_s7 + $0xb0] sm:$0xff]  ;;  %v168_v22 = vld [vmem:[%s961_s7 + $0xb8] sm:$0xff]  ;;  %v169_v24 = vld [vmem:[%s961_s7 + $0xc0] sm:$0xff]  ;;  %p822_p3 = pnand %p821_p2, %p815_p13 }
  0x1e   : > { %v154_v25 = vld [vmem:[%s961_s7 + $0x48] sm:$0xff]  ;;  %v155_v27 = vld [vmem:[%s961_s7 + $0x50] sm:$0xff]  ;;  %v156_v29 = vld [vmem:[%s961_s7 + $0x58] sm:$0xff] }
  0x1f   : > { %713 = vmatmul.mubr.msk.f32.gmra.mrb[2].mxu0 %vm182_vm1, %v148_v13  ;;  %737 = vmatmul.mubr.msk.f32.gmra.mrb[2].mxu1 %vm182_vm1, %v164_v14  ;;  %v170_v26 = vld [vmem:[%s961_s7 + $0xc8] sm:$0xff]  ;;  %v171_v28 = vld [vmem:[%s961_s7 + $0xd0] sm:$0xff]  ;;  %v172_v30 = vld [vmem:[%s961_s7 + $0xd8] sm:$0xff] }
  0x20   : > { %715 = vmatprep.mubr.msk.f32.mxu0 %vm182_vm1, %v149_v15  ;;  %739 = vmatprep.mubr.msk.f32.mxu1 %vm182_vm1, %v165_v16  ;;  %v157_v31 = vld [vmem:[%s961_s7 + $0x60] sm:$0xff]  ;;  %v158_v33 = vld [vmem:[%s961_s7 + $0x68] sm:$0xff]  ;;  %v159_v35 = vld [vmem:[%s961_s7 + $0x70] sm:$0xff] }
  0x21   : > { %v173_v32 = vld [vmem:[%s961_s7 + $0xe0] sm:$0xff]  ;;  %v174_v34 = vld [vmem:[%s961_s7 + $0xe8] sm:$0xff]  ;;  %v175_v36 = vld [vmem:[%s961_s7 + $0xf0] sm:$0xff] }
  0x22   : > { %v160_v37 = vld [vmem:[%s961_s7 + $0x78] sm:$0xff] }
  0x23   : > { %716 = vmatmul.mubr.msk.f32.gmra.mrb[4].mxu0 %vm182_vm1, %v150_v17  ;;  %740 = vmatmul.mubr.msk.f32.gmra.mrb[4].mxu1 %vm182_vm1, %v166_v18  ;;  %v176_v38 = vld [vmem:[%s961_s7 + $0xf8] sm:$0xff] }
  0x24   : > { %718 = vmatprep.mubr.msk.f32.mxu0 %vm182_vm1, %v151_v19  ;;  %742 = vmatprep.mubr.msk.f32.mxu1 %vm182_vm1, %v167_v20 }
  0x27   : > { %719 = vmatmul.mubr.msk.f32.gmra.mrb[6].mxu0 %vm182_vm1, %v152_v21  ;;  %743 = vmatmul.mubr.msk.f32.gmra.mrb[6].mxu1 %vm182_vm1, %v168_v22 }
  0x28   : > { %721 = vmatprep.mubr.msk.f32.mxu0 %vm182_vm1, %v153_v23  ;;  %745 = vmatprep.mubr.msk.f32.mxu1 %vm182_vm1, %v169_v24 }
  0x2b   : > { %722 = vmatmul.mubr.msk.f32.gmra.mrb[8].mxu0 %vm182_vm1, %v154_v25  ;;  %746 = vmatmul.mubr.msk.f32.gmra.mrb[8].mxu1 %vm182_vm1, %v170_v26 }
  0x2c   : > { %724 = vmatprep.mubr.msk.f32.mxu0 %vm182_vm1, %v155_v27  ;;  %748 = vmatprep.mubr.msk.f32.mxu1 %vm182_vm1, %v171_v28 }
  0x2f   : > { %725 = vmatmul.mubr.msk.f32.gmra.mrb[10].mxu0 %vm182_vm1, %v156_v29  ;;  %749 = vmatmul.mubr.msk.f32.gmra.mrb[10].mxu1 %vm182_vm1, %v172_v30 }
  0x30   : > { %727 = vmatprep.mubr.msk.f32.mxu0 %vm182_vm1, %v157_v31  ;;  %751 = vmatprep.mubr.msk.f32.mxu1 %vm182_vm1, %v173_v32 }
  0x33   : > { %728 = vmatmul.mubr.msk.f32.gmra.mrb[12].mxu0 %vm182_vm1, %v158_v33  ;;  %752 = vmatmul.mubr.msk.f32.gmra.mrb[12].mxu1 %vm182_vm1, %v174_v34 }
  0x34   : > { %730 = vmatprep.mubr.msk.f32.mxu0 %vm182_vm1, %v159_v35  ;;  %754 = vmatprep.mubr.msk.f32.mxu1 %vm182_vm1, %v175_v36 }
  0x37   : > { %731 = vmatmul.mubr.msk.f32.gmra.mrb[14].mxu0 %vm182_vm1, %v160_v37  ;;  %755 = vmatmul.mubr.msk.f32.gmra.mrb[14].mxu1 %vm182_vm1, %v176_v38 }
  0xee   : > { %v711_v39 = vpop.f32.mrb[0].mxu0  ;;  %v735_v40 = vpop.f32.mrb[0].mxu1 }
  0xef   : > { %509 = vst [vmem:[%s1034_s16 + $0x8] sm:$0xff] %v711_v39  ;;  %525 = vst [vmem:[%s1034_s16 + $0x88] sm:$0xff] %v735_v40  ;;  %v349_v41 = vpop.f32.mrb[1].mxu0  ;;  %v429_v42 = vpop.f32.mrb[1].mxu1 }
  0xf0   : > { %508 = vst [vmem:[%s1034_s16] sm:$0xff] %v349_v41  ;;  %524 = vst [vmem:[%s1034_s16 + $0x80] sm:$0xff] %v429_v42 }
  0xf2   : > { %v714_v43 = vpop.f32.mrb[2].mxu0  ;;  %v738_v44 = vpop.f32.mrb[2].mxu1 }
  0xf3   : > { %511 = vst [vmem:[%s1034_s16 + $0x18] sm:$0xff] %v714_v43  ;;  %527 = vst [vmem:[%s1034_s16 + $0x98] sm:$0xff] %v738_v44  ;;  %v359_v45 = vpop.f32.mrb[3].mxu0  ;;  %v439_v46 = vpop.f32.mrb[3].mxu1 }
  0xf4   : > { %510 = vst [vmem:[%s1034_s16 + $0x10] sm:$0xff] %v359_v45  ;;  %526 = vst [vmem:[%s1034_s16 + $0x90] sm:$0xff] %v439_v46 }
  0xf6   : > { %v717_v47 = vpop.f32.mrb[4].mxu0  ;;  %v741_v48 = vpop.f32.mrb[4].mxu1 }
  0xf7   : > { %513 = vst [vmem:[%s1034_s16 + $0x28] sm:$0xff] %v717_v47  ;;  %529 = vst [vmem:[%s1034_s16 + $0xa8] sm:$0xff] %v741_v48  ;;  %v369_v49 = vpop.f32.mrb[5].mxu0  ;;  %v449_v50 = vpop.f32.mrb[5].mxu1 }
  0xf8   : > { %512 = vst [vmem:[%s1034_s16 + $0x20] sm:$0xff] %v369_v49  ;;  %528 = vst [vmem:[%s1034_s16 + $0xa0] sm:$0xff] %v449_v50 }
  0xfa   : > { %v720_v51 = vpop.f32.mrb[6].mxu0  ;;  %v744_v52 = vpop.f32.mrb[6].mxu1 }
  0xfb   : > { %515 = vst [vmem:[%s1034_s16 + $0x38] sm:$0xff] %v720_v51  ;;  %531 = vst [vmem:[%s1034_s16 + $0xb8] sm:$0xff] %v744_v52  ;;  %v379_v53 = vpop.f32.mrb[7].mxu0  ;;  %v459_v54 = vpop.f32.mrb[7].mxu1 }
  0xfc   : > { %514 = vst [vmem:[%s1034_s16 + $0x30] sm:$0xff] %v379_v53  ;;  %530 = vst [vmem:[%s1034_s16 + $0xb0] sm:$0xff] %v459_v54 }
  0xfe   : > { %v723_v55 = vpop.f32.mrb[8].mxu0  ;;  %v747_v56 = vpop.f32.mrb[8].mxu1 }
  0xff   : > { %517 = vst [vmem:[%s1034_s16 + $0x48] sm:$0xff] %v723_v55  ;;  %533 = vst [vmem:[%s1034_s16 + $0xc8] sm:$0xff] %v747_v56  ;;  %v389_v57 = vpop.f32.mrb[9].mxu0  ;;  %v469_v58 = vpop.f32.mrb[9].mxu1 }
 0x100   : > { %516 = vst [vmem:[%s1034_s16 + $0x40] sm:$0xff] %v389_v57  ;;  %532 = vst [vmem:[%s1034_s16 + $0xc0] sm:$0xff] %v469_v58 }
 0x102   : > { %v726_v59 = vpop.f32.mrb[10].mxu0  ;;  %v750_v60 = vpop.f32.mrb[10].mxu1 }
 0x103   : > { %519 = vst [vmem:[%s1034_s16 + $0x58] sm:$0xff] %v726_v59  ;;  %535 = vst [vmem:[%s1034_s16 + $0xd8] sm:$0xff] %v750_v60  ;;  %v399_v61 = vpop.f32.mrb[11].mxu0  ;;  %v479_v62 = vpop.f32.mrb[11].mxu1 }
 0x104   : > { %518 = vst [vmem:[%s1034_s16 + $0x50] sm:$0xff] %v399_v61  ;;  %534 = vst [vmem:[%s1034_s16 + $0xd0] sm:$0xff] %v479_v62 }
 0x106   : > { %v729_v63 = vpop.f32.mrb[12].mxu0  ;;  %v753_v0 = vpop.f32.mrb[12].mxu1 }
 0x107   : > { %521 = vst [vmem:[%s1034_s16 + $0x68] sm:$0xff] %v729_v63  ;;  %537 = vst [vmem:[%s1034_s16 + $0xe8] sm:$0xff] %v753_v0  ;;  %v409_v1 = vpop.f32.mrb[13].mxu0  ;;  %v489_v2 = vpop.f32.mrb[13].mxu1 }
 0x108   : > { %520 = vst [vmem:[%s1034_s16 + $0x60] sm:$0xff] %v409_v1  ;;  %536 = vst [vmem:[%s1034_s16 + $0xe0] sm:$0xff] %v489_v2 }
 0x10a   : > { %v732_v3 = vpop.f32.mrb[14].mxu0  ;;  %v756_v4 = vpop.f32.mrb[14].mxu1 }
 0x10b   : > { %523 = vst [vmem:[%s1034_s16 + $0x78] sm:$0xff] %v732_v3  ;;  %539 = vst [vmem:[%s1034_s16 + $0xf8] sm:$0xff] %v756_v4  ;;  %v419_v5 = vpop.f32.mrb[15].mxu0  ;;  %v499_v6 = vpop.f32.mrb[15].mxu1 }
 0x10c   : > { %522 = vst [vmem:[%s1034_s16 + $0x70] sm:$0xff] %v419_v5  ;;  %538 = vst [vmem:[%s1034_s16 + $0xf0] sm:$0xff] %v499_v6 }
 0x10d   : > { %825 = shalt.err (!%p822_p3)
}
 0x10e   : > { %s826_s29 = scalar_lea.hbm %s1069_s24, 4096  ;;  %s830_s4 = scalar_lea.hbm %s1122_s2, 8192 }
 0x10f   : > { %p827_p4 = scmp.ne.s32.totalorder %s1069_s24, %s826_s29  ;;  %p831_p9 = scmp.lt.u32.totalorder %s1069_s24, %s1122_s2 }
 0x110   : > { %p832_p10 = scmp.lt.u32.totalorder %s830_s4, %s826_s29  ;;  %p834_p12 = scmp.lt.u32.totalorder %s826_s29, %s1069_s24 }
 0x111   : > { %p828_p7 = pnand %p827_p4, %p932_p5 }
 0x112   : > { %p833_p11 = por %p832_p10, %p831_p9 }
 0x113   : > { %p829_p8 = pneg %p828_p7 }
 0x114   : > { %p835_p13 = por %p834_p12, %p833_p11 }
 0x116   : > { %p836_p0 = pnand %p835_p13, %p829_p8 }
 0x118   : > { %839 = shalt.err (!%p836_p0)
}
 0x119   : > { %s877_s7 = smov 128   ;;  %s878_s8 = smov 8  }
 0x11a   : > { %771 = dma.vmem_to_hbm [thread:$0]  (%p932_p5), %s1071_s21, 4096, %s1069_s24, %s1079_s13, %s877_s7, %s877_s7, %s878_s8  }
 0x11b PF: > { %p777_p1 = scmp.ge.s32.totalorder %s874_s12, 2  ;;  %s569_s14 = sand.u32 1, %s862_s9  }
 0x11c   : > { %s570_s16 = scalar_lea.sflag [#allocation3], %s569_s14 }
 0x11d   : > { %p774_p2 = pnand %p777_p1, %p936_p6 }
 0x11f   : > { %857 = dma.done.wait (!%p774_p2), %s570_s16, 4096  }
 0x120   : > { %859 = vsyncadd (!%p774_p2), %s570_s16, 4294963200  ;;  %p12_p3 = scmp.ge.s32.totalorder %s919_s15, 4   ;;  %s1125_s9 = smov %s866_s10 }
 0x121   : > { %s1126_s10 = smov %s870_s11  ;;  %s1127_s11 = smov %s930_s18 }
 0x122   : > { %s1128_s12 = smov %s919_s15  ;;  %14 = sbr.rel (!%p12_p3) target bundleno = 3 (0x3), region = 63 }
 0x129   :  { %575 = vsyncpa [#allocation3], 1 }
 0x12a   :  { %577 = vsyncpa [#allocation3 + $0x1], 1 }

</bundles_post_ra>
